<compile_context>
chip_gen: v5e
topology: v5e:2x2
jax: 0.10.0
libtpu: 0.0.40
codegen_flags: <defaults>
</compile_context>

<pallas_src>
import jax
import jax.numpy as jnp
from jax import lax
from jax.experimental import pallas as pl
from jax.experimental.pallas import tpu as pltpu

LN_EPS = 1e-5  # PyTorch nn.LayerNorm default


# ---------------------------------------------------------------------------
# Kernel 1: per-node neighbor attention + residual + LayerNorm.
#   q = h Wq^T ; k_j = h_nbr_j Wk^T + e_j ; s_j = q.k_j / sqrt(H)
#   alpha = softmax_j(s_j) ; weighted = sum_j alpha_j (h_nbr_j Wv^T + e_j)
#   out = LN(h + weighted Wo^T)
# Block = a tile of `tn` nodes; the K neighbor slots are static.
# ---------------------------------------------------------------------------
def _node_update_kernel(h_ref, nbrn_ref, nbre_ref,
                        wq_ref, wkv_ref, wo_ref,
                        gamma_ref, beta_ref, out_ref):
    K, tn, H = nbrn_ref.shape
    cdt = wq_ref.dtype                                                  # bf16

    h = h_ref[...]                                                      # (tn,H) f32
    q = jnp.dot(h.astype(cdt), wq_ref[...],
                preferred_element_type=jnp.float32)                     # (tn,H) f32

    # One MXU call covering all K neighbor slots (leading-dim merge is free).
    nb_all = nbrn_ref[...].reshape(K * tn, H)                           # (K*tn, H)
    kv_all = jnp.dot(nb_all, wkv_ref[...],
                     preferred_element_type=jnp.float32)                # (K*tn, 2H)

    inv_sqrt_h = 1.0 / (H ** 0.5)

    def slot(j):
        kv = kv_all[j * tn:(j + 1) * tn]                                # (tn, 2H)
        eb = nbre_ref[j].astype(jnp.float32)                            # (tn, H)
        kj = kv[:, :H] + eb
        vj = kv[:, H:] + eb
        sj = jnp.sum(q * kj, axis=-1, keepdims=True) * inv_sqrt_h       # (tn, 1)
        return sj, vj

    # Online softmax over the K slots: only one value slice live at a time.
    m, acc = slot(0)
    den = jnp.ones_like(m)
    for j in range(1, K):
        sj, vj = slot(j)
        m_new = jnp.maximum(m, sj)
        scale = jnp.exp(m - m_new)
        w = jnp.exp(sj - m_new)
        den = den * scale + w
        acc = acc * scale + w * vj
        m = m_new
    weighted = acc * pl.reciprocal(den, approx=True)                    # (tn, H)

    o = jnp.dot(weighted.astype(cdt), wo_ref[...],
                preferred_element_type=jnp.float32)                     # (tn, H)
    x = h + o

    # LayerNorm with single-pass statistics (sum + sum-of-squares).
    sum_x = jnp.sum(x, axis=-1, keepdims=True)
    sum_x2 = jnp.sum(x * x, axis=-1, keepdims=True)
    mean = sum_x * (1.0 / H)
    var = sum_x2 * (1.0 / H) - mean * mean
    normed = (x - mean) * lax.rsqrt(var + LN_EPS)
    # TODO(synk): with H < 128 this store is lane-sparse (vst.msk on H/128
    # lanes); packing 128//H row-groups per lane slab would need an in-kernel
    # relayout and was left out in favor of robust lowering.
    out_ref[...] = (normed * gamma_ref[...] + beta_ref[...]).astype(out_ref.dtype)


# ---------------------------------------------------------------------------
# Kernel 2: triple MLP — relu([hi|he|hj] W1^T + b1) W2^T + b2 with the concat
# done once in the wrapper so the MXU sees a single 3H-contraction matmul.
# ---------------------------------------------------------------------------
def _triple_kernel(hcat_ref, w1_ref, b1_ref, w2_ref, b2_ref, out_ref):
    acc = jnp.dot(hcat_ref[...], w1_ref[...],
                  preferred_element_type=jnp.float32)                   # (tt, H)
    hidden = jnp.maximum(acc + b1_ref[...], 0.0)
    out = jnp.dot(hidden.astype(w2_ref.dtype), w2_ref[...],
                  preferred_element_type=jnp.float32) + b2_ref[...]
    out_ref[...] = out.astype(out_ref.dtype)


# ---------------------------------------------------------------------------
# Helpers
# ---------------------------------------------------------------------------
def _round_up(x, m):
    return ((x + m - 1) // m) * m


def _pad_rows(x, n_to):
    pad = n_to - x.shape[0]
    if pad == 0:
        return x
    return jnp.pad(x, ((0, pad),) + ((0, 0),) * (x.ndim - 1))


def _pick_tile(n_rows, row_block):
    """Row tile + padded extent.  Keeps >=2 grid steps when there is enough
    work so v7x megacore can split row tiles across its two TensorCores."""
    rows8 = _round_up(max(n_rows, 1), 8)
    if 16 <= rows8 <= row_block:
        tile = _round_up(pl.cdiv(rows8, 2), 8)
    else:
        tile = min(row_block, rows8)
    return tile, _round_up(rows8, tile)


def _vmem_kwargs(est_bytes):
    # Raise the scoped-VMEM limit only when the working set needs it
    # (defaults: 16 MiB v5e, 32 MiB v6e/v7x; v7x physical VMEM is only 64 MiB).
    if est_bytes > 12 * 1024 * 1024:
        return {"vmem_limit_bytes": int(min(2 * est_bytes, 56 * 1024 * 1024))}
    return {}


# ---------------------------------------------------------------------------
# Wrapper
# ---------------------------------------------------------------------------
def kg_adapter_forward(node_reps, edge_reps, neighbor_idx, neighbor_edge_idx,
                       triples, params, *, row_block=1024,
                       compute_dtype=jnp.bfloat16):
    N, H = node_reps.shape
    K = neighbor_idx.shape[1]
    T = triples.shape[0]
    cd = compute_dtype
    cbytes = jnp.dtype(cd).itemsize

    # -------------------- node / attention path ---------------------------
    tn, Np = _pick_tile(N, row_block)
    node_p = _pad_rows(node_reps, Np)          # f32 (residual / LN precision)
    nidx_p = _pad_rows(neighbor_idx, Np)
    eidx_p = _pad_rows(neighbor_edge_idx, Np)

    # TODO(synk): if N*H / E*H fit in VMEM, keep the node/edge tables resident
    # and gather in-kernel (PrefetchScalarGridSpec + SMEM indices) instead of
    # materializing the (K, Np, H) gathered copies in HBM.
    nbr_n = node_reps[nidx_p.T].astype(cd)     # (K, Np, H) bf16 -> halves HBM reads
    nbr_e = edge_reps[eidx_p.T].astype(cd)     # (K, Np, H) bf16

    wq_t = params["wq_t"].astype(cd)
    wkv_t = jnp.concatenate([params["wk_t"], params["wv_t"]], axis=-1).astype(cd)
    wo_t = params["wo_t"].astype(cd)

    est_node = (2 * (tn * H * 4 + 2 * K * tn * H * cbytes + tn * H * 4)   # dbl-buffered I/O
                + K * tn * 2 * H * 4 + 6 * tn * H * 4                     # kv_all + temps
                + 4 * H * H * cbytes)                                     # weights

    node_out = pl.pallas_call(
        _node_update_kernel,
        out_shape=jax.ShapeDtypeStruct((Np, H), jnp.float32),
        grid=(Np // tn,),
        in_specs=[
            pl.BlockSpec((tn, H), lambda i: (i, 0)),          # node tile (f32)
            pl.BlockSpec((K, tn, H), lambda i: (0, i, 0)),    # gathered nbr nodes
            pl.BlockSpec((K, tn, H), lambda i: (0, i, 0)),    # gathered nbr edges
            pl.BlockSpec((H, H), lambda i: (0, 0)),           # Wq^T
            pl.BlockSpec((H, 2 * H), lambda i: (0, 0)),       # [Wk^T | Wv^T]
            pl.BlockSpec((H, H), lambda i: (0, 0)),           # Wo^T
            pl.BlockSpec((1, H), lambda i: (0, 0)),           # LN gamma
            pl.BlockSpec((1, H), lambda i: (0, 0)),           # LN beta
        ],
        out_specs=pl.BlockSpec((tn, H), lambda i: (i, 0)),
        compiler_params=pltpu.CompilerParams(
            dimension_semantics=("parallel",), **_vmem_kwargs(est_node)),
    )(node_p, nbr_n, nbr_e, wq_t, wkv_t, wo_t,
      params["ln_gamma"], params["ln_beta"])
    updated_node_reps = node_out[:N]

    # -------------------- triple path --------------------------------------
    tt, Tp = _pick_tile(T, row_block)
    trip_p = _pad_rows(triples, Tp)
    # One concatenated operand -> a single (tt,3H)@(3H,H) MXU matmul per tile.
    hcat = jnp.concatenate([node_reps[trip_p[:, 0]],
                            edge_reps[trip_p[:, 1]],
                            node_reps[trip_p[:, 2]]], axis=-1).astype(cd)  # (Tp, 3H)
    w1_t = params["w1_t"].astype(cd)           # (3H, H)
    w2_t = params["w2_t"].astype(cd)           # (H, H)

    est_tri = (2 * (tt * 3 * H * cbytes + tt * H * 4) + 4 * tt * H * 4
               + (3 * H * H + H * H) * cbytes)

    tri_out = pl.pallas_call(
        _triple_kernel,
        out_shape=jax.ShapeDtypeStruct((Tp, H), jnp.float32),
        grid=(Tp // tt,),
        in_specs=[
            pl.BlockSpec((tt, 3 * H), lambda i: (i, 0)),   # [hi | he | hj]
            pl.BlockSpec((3 * H, H), lambda i: (0, 0)),    # W1^T
            pl.BlockSpec((1, H), lambda i: (0, 0)),        # b1
            pl.BlockSpec((H, H), lambda i: (0, 0)),        # W2^T
            pl.BlockSpec((1, H), lambda i: (0, 0)),        # b2
        ],
        out_specs=pl.BlockSpec((tt, H), lambda i: (i, 0)),
        compiler_params=pltpu.CompilerParams(
            dimension_semantics=("parallel",), **_vmem_kwargs(est_tri)),
    )(hcat, w1_t, params["b1"], w2_t, params["b2"])
    triple_reps = tri_out[:T]

    return updated_node_reps, triple_reps


# ---------------------------------------------------------------------------
# Pure-JAX reference with identical semantics and the same bf16 operand
# rounding as the kernels (so the check measures kernel wiring, not dtype).
# ---------------------------------------------------------------------------
def ref_forward(node_reps, edge_reps, neighbor_idx, neighbor_edge_idx, triples,
                params, compute_dtype=jnp.bfloat16):
    f32 = jnp.float32
    r = lambda a: a.astype(compute_dtype).astype(f32)
    N, H = node_reps.shape

    nbr_n = r(node_reps[neighbor_idx])         # (N, K, H)
    nbr_e = r(edge_reps[neighbor_edge_idx])    # (N, K, H)
    wq, wk, wv, wo = (r(params[k]) for k in ("wq_t", "wk_t", "wv_t", "wo_t"))
    q = r(node_reps) @ wq
    k = nbr_n @ wk + nbr_e
    scores = jnp.einsum("nh,nkh->nk", q, k) / (H ** 0.5)
    alpha = jax.nn.softmax(scores, axis=-1)
    v = nbr_n @ wv + nbr_e
    ws = jnp.einsum("nk,nkh->nh", alpha, v)
    x = node_reps + r(ws) @ wo
    mean = x.mean(-1, keepdims=True)
    var = ((x - mean) ** 2).mean(-1, keepdims=True)
    upd = (x - mean) / jnp.sqrt(var + LN_EPS) * params["ln_gamma"] + params["ln_beta"]

    hcat = r(jnp.concatenate([node_reps[triples[:, 0]], edge_reps[triples[:, 1]],
                              node_reps[triples[:, 2]]], axis=-1))
    h = jnp.maximum(hcat @ r(params["w1_t"]) + params["b1"], 0.0)
    tri = r(h) @ r(params["w2_t"]) + params["b2"]
    return upd, tri


if __name__ == "__main__":
    H, N, E, K, T = 32, 8, 8, 4, 8

    key = jax.random.PRNGKey(0)
    ks = jax.random.split(key, 13)
    node_reps = jax.random.normal(ks[0], (N, H), jnp.float32)
    edge_reps = jax.random.normal(ks[1], (E, H), jnp.float32)
    neighbor_idx = jax.random.randint(ks[2], (N, K), 0, N)
    neighbor_edge_idx = jax.random.randint(ks[3], (N, K), 0, E)
    triples = jnp.stack([jax.random.randint(ks[4], (T,), 0, N),
                         jax.random.randint(ks[5], (T,), 0, E),
                         jax.random.randint(ks[6], (T,), 0, N)], axis=-1)

    # Deterministic parameter init (weights stored pre-transposed: y = x @ W^T).
    s = 1.0 / (H ** 0.5)
    params = {
        "wq_t": jax.random.normal(ks[7], (H, H), jnp.float32) * s,
        "wk_t": jax.random.normal(ks[8], (H, H), jnp.float32) * s,
        "wv_t": jax.random.normal(ks[9], (H, H), jnp.float32) * s,
        "wo_t": jax.random.normal(ks[10], (H, H), jnp.float32) * s,
        "ln_gamma": jnp.ones((1, H), jnp.float32),
        "ln_beta": jnp.zeros((1, H), jnp.float32),
        "w1_t": jax.random.normal(ks[11], (3 * H, H), jnp.float32) * (1.0 / (3 * H) ** 0.5),
        "b1": jnp.zeros((1, H), jnp.float32),
        "w2_t": jax.random.normal(ks[12], (H, H), jnp.float32) * s,
        "b2": jnp.zeros((1, H), jnp.float32),
    }

    upd, tri = jax.jit(kg_adapter_forward)(
        node_reps, edge_reps, neighbor_idx, neighbor_edge_idx, triples, params)
    jax.block_until_ready((upd, tri))

    ref_upd, ref_tri = ref_forward(
        node_reps, edge_reps, neighbor_idx, neighbor_edge_idx, triples, params)
    assert upd.shape == (N, H) and tri.shape == (T, H)
    # Tolerances cover bf16 matmul operands, accumulation-order differences and
    # the EUP approximate reciprocal in the softmax denominator.
    assert jnp.allclose(upd, ref_upd, atol=2e-2, rtol=2e-2), \
        float(jnp.max(jnp.abs(upd - ref_upd)))
    assert jnp.allclose(tri, ref_tri, atol=2e-2, rtol=2e-2), \
        float(jnp.max(jnp.abs(tri - ref_tri)))

    print("KERNEL_OK")
</pallas_src>

<mosaic_0001>
module attributes {stable_mosaic.version = 11 : i64} {
  func.func @_triple_kernel(%arg0: i32, %arg1: memref<8x96xbf16, #tpu.memory_space<vmem>>, %arg2: memref<96x32xbf16, #tpu.memory_space<vmem>>, %arg3: memref<1x32xf32, #tpu.memory_space<vmem>>, %arg4: memref<32x32xbf16, #tpu.memory_space<vmem>>, %arg5: memref<1x32xf32, #tpu.memory_space<vmem>>, %arg6: memref<8x32xf32, #tpu.memory_space<vmem>>) attributes {dimension_semantics = [#tpu.dimension_semantics<parallel>], iteration_bounds = array<i64: 1>, scalar_prefetch = 0 : i64, scratch_operands = 0 : i64, tpu.core_type = #tpu.core_type<tc>, window_params = [{transform_indices = @transform_0, window_bounds = array<i64: 8, 96>}, {pipeline_mode = #tpu.pipeline_mode<synchronous>, transform_indices = @transform_1, window_bounds = array<i64: 96, 32>}, {pipeline_mode = #tpu.pipeline_mode<synchronous>, transform_indices = @transform_2, window_bounds = array<i64: 1, 32>}, {pipeline_mode = #tpu.pipeline_mode<synchronous>, transform_indices = @transform_3, window_bounds = array<i64: 32, 32>}, {pipeline_mode = #tpu.pipeline_mode<synchronous>, transform_indices = @transform_4, window_bounds = array<i64: 1, 32>}, {transform_indices = @transform_5, window_bounds = array<i64: 8, 32>}]} {
    %c0 = arith.constant 0 : index
    %c0_0 = arith.constant 0 : index
    %0 = vector.load %arg1[%c0, %c0_0] : memref<8x96xbf16, #tpu.memory_space<vmem>>, vector<8x96xbf16>
    %c0_1 = arith.constant 0 : index
    %c0_2 = arith.constant 0 : index
    %1 = vector.load %arg2[%c0_1, %c0_2] : memref<96x32xbf16, #tpu.memory_space<vmem>>, vector<96x32xbf16>
    %cst = arith.constant dense<0.000000e+00> : vector<8x32xf32>
    %2 = tpu.matmul %0, %1, %cst {dimension_numbers = #tpu.dot_dimension_numbers<[1], [0], [0], [1], [0, 0, 1, 1], [], []>} : vector<8x96xbf16>, vector<96x32xbf16>, vector<8x32xf32> -> vector<8x32xf32>
    %c0_3 = arith.constant 0 : index
    %c0_4 = arith.constant 0 : index
    %3 = vector.load %arg3[%c0_3, %c0_4] : memref<1x32xf32, #tpu.memory_space<vmem>>, vector<1x32xf32>
    %4 = vector.broadcast %3 : vector<1x32xf32> to vector<8x32xf32>
    %5 = arith.addf %2, %4 : vector<8x32xf32>
    %cst_5 = arith.constant 0.000000e+00 : f32
    %6 = vector.broadcast %cst_5 : f32 to vector<8x32xf32>
    %7 = arith.maximumf %5, %6 : vector<8x32xf32>
    %8 = arith.truncf %7 : vector<8x32xf32> to vector<8x32xbf16>
    %c0_6 = arith.constant 0 : index
    %c0_7 = arith.constant 0 : index
    %9 = vector.load %arg4[%c0_6, %c0_7] : memref<32x32xbf16, #tpu.memory_space<vmem>>, vector<32x32xbf16>
    %cst_8 = arith.constant dense<0.000000e+00> : vector<8x32xf32>
    %10 = tpu.matmul %8, %9, %cst_8 {dimension_numbers = #tpu.dot_dimension_numbers<[1], [0], [0], [1], [0, 0, 1, 1], [], []>} : vector<8x32xbf16>, vector<32x32xbf16>, vector<8x32xf32> -> vector<8x32xf32>
    %c0_9 = arith.constant 0 : index
    %c0_10 = arith.constant 0 : index
    %11 = vector.load %arg5[%c0_9, %c0_10] : memref<1x32xf32, #tpu.memory_space<vmem>>, vector<1x32xf32>
    %12 = vector.broadcast %11 : vector<1x32xf32> to vector<8x32xf32>
    %13 = arith.addf %10, %12 : vector<8x32xf32>
    %c0_11 = arith.constant 0 : index
    %c0_12 = arith.constant 0 : index
    %14 = vector.load %arg6[%c0_11, %c0_12] : memref<8x32xf32, #tpu.memory_space<vmem>>, vector<8x32xf32>
    tpu.vector_store %arg6[%c0_11, %c0_12], %13 {strides = array<i32>} : memref<8x32xf32, #tpu.memory_space<vmem>>, vector<8x32xf32>,
    return
  }
  func.func @transform_0(%arg0: i32) -> (i32, i32) {
    %c0_i32 = arith.constant 0 : i32
    %c0_i32_0 = arith.constant 0 : i32
    return %arg0, %c0_i32 : i32, i32
  }
  func.func @transform_1(%arg0: i32) -> (i32, i32) {
    %c0_i32 = arith.constant 0 : i32
    %c0_i32_0 = arith.constant 0 : i32
    %c0_i32_1 = arith.constant 0 : i32
    return %c0_i32, %c0_i32_0 : i32, i32
  }
  func.func @transform_2(%arg0: i32) -> (i32, i32) {
    %c0_i32 = arith.constant 0 : i32
    %c0_i32_0 = arith.constant 0 : i32
    %c0_i32_1 = arith.constant 0 : i32
    return %c0_i32, %c0_i32_0 : i32, i32
  }
  func.func @transform_3(%arg0: i32) -> (i32, i32) {
    %c0_i32 = arith.constant 0 : i32
    %c0_i32_0 = arith.constant 0 : i32
    %c0_i32_1 = arith.constant 0 : i32
    return %c0_i32, %c0_i32_0 : i32, i32
  }
  func.func @transform_4(%arg0: i32) -> (i32, i32) {
    %c0_i32 = arith.constant 0 : i32
    %c0_i32_0 = arith.constant 0 : i32
    %c0_i32_1 = arith.constant 0 : i32
    return %c0_i32, %c0_i32_0 : i32, i32
  }
  func.func @transform_5(%arg0: i32) -> (i32, i32) {
    %c0_i32 = arith.constant 0 : i32
    %c0_i32_0 = arith.constant 0 : i32
    return %arg0, %c0_i32 : i32, i32
  }
}

module attributes {stable_mosaic.version = 11 : i64} {
  func.func @_node_update_kernel(%arg0: i32, %arg1: memref<8x32xf32, #tpu.memory_space<vmem>>, %arg2: memref<4x8x32xbf16, #tpu.memory_space<vmem>>, %arg3: memref<4x8x32xbf16, #tpu.memory_space<vmem>>, %arg4: memref<32x32xbf16, #tpu.memory_space<vmem>>, %arg5: memref<32x64xbf16, #tpu.memory_space<vmem>>, %arg6: memref<32x32xbf16, #tpu.memory_space<vmem>>, %arg7: memref<1x32xf32, #tpu.memory_space<vmem>>, %arg8: memref<1x32xf32, #tpu.memory_space<vmem>>, %arg9: memref<8x32xf32, #tpu.memory_space<vmem>>) attributes {dimension_semantics = [#tpu.dimension_semantics<parallel>], iteration_bounds = array<i64: 1>, scalar_prefetch = 0 : i64, scratch_operands = 0 : i64, tpu.core_type = #tpu.core_type<tc>, window_params = [{transform_indices = @transform_0, window_bounds = array<i64: 8, 32>}, {transform_indices = @transform_1, window_bounds = array<i64: 4, 8, 32>}, {transform_indices = @transform_2, window_bounds = array<i64: 4, 8, 32>}, {pipeline_mode = #tpu.pipeline_mode<synchronous>, transform_indices = @transform_3, window_bounds = array<i64: 32, 32>}, {pipeline_mode = #tpu.pipeline_mode<synchronous>, transform_indices = @transform_4, window_bounds = array<i64: 32, 64>}, {pipeline_mode = #tpu.pipeline_mode<synchronous>, transform_indices = @transform_5, window_bounds = array<i64: 32, 32>}, {pipeline_mode = #tpu.pipeline_mode<synchronous>, transform_indices = @transform_6, window_bounds = array<i64: 1, 32>}, {pipeline_mode = #tpu.pipeline_mode<synchronous>, transform_indices = @transform_7, window_bounds = array<i64: 1, 32>}, {transform_indices = @transform_8, window_bounds = array<i64: 8, 32>}]} {
    %c0 = arith.constant 0 : index
    %c0_0 = arith.constant 0 : index
    %0 = vector.load %arg1[%c0, %c0_0] : memref<8x32xf32, #tpu.memory_space<vmem>>, vector<8x32xf32>
    %1 = arith.truncf %0 : vector<8x32xf32> to vector<8x32xbf16>
    %c0_1 = arith.constant 0 : index
    %c0_2 = arith.constant 0 : index
    %2 = vector.load %arg4[%c0_1, %c0_2] : memref<32x32xbf16, #tpu.memory_space<vmem>>, vector<32x32xbf16>
    %cst = arith.constant dense<0.000000e+00> : vector<8x32xf32>
    %3 = tpu.matmul %1, %2, %cst {dimension_numbers = #tpu.dot_dimension_numbers<[1], [0], [0], [1], [0, 0, 1, 1], [], []>} : vector<8x32xbf16>, vector<32x32xbf16>, vector<8x32xf32> -> vector<8x32xf32>
    %c0_3 = arith.constant 0 : index
    %c0_4 = arith.constant 0 : index
    %c0_5 = arith.constant 0 : index
    %4 = vector.load %arg2[%c0_3, %c0_4, %c0_5] : memref<4x8x32xbf16, #tpu.memory_space<vmem>>, vector<4x8x32xbf16>
    %5 = vector.shape_cast %4 : vector<4x8x32xbf16> to vector<32x32xbf16>
    %c0_6 = arith.constant 0 : index
    %c0_7 = arith.constant 0 : index
    %6 = vector.load %arg5[%c0_6, %c0_7] : memref<32x64xbf16, #tpu.memory_space<vmem>>, vector<32x64xbf16>
    %cst_8 = arith.constant dense<0.000000e+00> : vector<32x64xf32>
    %7 = tpu.matmul %5, %6, %cst_8 {dimension_numbers = #tpu.dot_dimension_numbers<[1], [0], [0], [1], [0, 0, 1, 1], [], []>} : vector<32x32xbf16>, vector<32x64xbf16>, vector<32x64xf32> -> vector<32x64xf32>
    %8 = vector.extract_strided_slice %7 {offsets = [0, 0], sizes = [8, 64], strides = [1, 1]} : vector<32x64xf32> to vector<8x64xf32>
    %c0_9 = arith.constant 0 : index
    %c0_10 = arith.constant 0 : index
    %c0_11 = arith.constant 0 : index
    %9 = vector.load %arg3[%c0_9, %c0_10, %c0_11] : memref<4x8x32xbf16, #tpu.memory_space<vmem>>, vector<1x8x32xbf16>
    %10 = vector.shape_cast %9 : vector<1x8x32xbf16> to vector<8x32xbf16>
    %11 = arith.extf %10 : vector<8x32xbf16> to vector<8x32xf32>
    %12 = vector.extract_strided_slice %8 {offsets = [0, 0], sizes = [8, 32], strides = [1, 1]} : vector<8x64xf32> to vector<8x32xf32>
    %13 = arith.addf %12, %11 : vector<8x32xf32>
    %14 = vector.extract_strided_slice %8 {offsets = [0, 32], sizes = [8, 32], strides = [1, 1]} : vector<8x64xf32> to vector<8x32xf32>
    %15 = arith.addf %14, %11 : vector<8x32xf32>
    %16 = arith.mulf %3, %13 : vector<8x32xf32>
    %cst_12 = arith.constant dense<0.000000e+00> : vector<8xf32>
    %17 = vector.multi_reduction <add>, %16, %cst_12 [1] : vector<8x32xf32> to vector<8xf32>
    %18 = vector.shape_cast %17 : vector<8xf32> to vector<8x1xf32>
    %cst_13 = arith.constant 0.176776692 : f32
    %19 = vector.broadcast %cst_13 : f32 to vector<8x1xf32>
    %20 = arith.mulf %18, %19 : vector<8x1xf32>
    %cst_14 = arith.constant 1.000000e+00 : f32
    %21 = vector.broadcast %cst_14 : f32 to vector<8x1xf32>
    %22 = vector.extract_strided_slice %7 {offsets = [8, 0], sizes = [8, 64], strides = [1, 1]} : vector<32x64xf32> to vector<8x64xf32>
    %c1 = arith.constant 1 : index
    %c0_15 = arith.constant 0 : index
    %c0_16 = arith.constant 0 : index
    %23 = vector.load %arg3[%c1, %c0_15, %c0_16] : memref<4x8x32xbf16, #tpu.memory_space<vmem>>, vector<1x8x32xbf16>
    %24 = vector.shape_cast %23 : vector<1x8x32xbf16> to vector<8x32xbf16>
    %25 = arith.extf %24 : vector<8x32xbf16> to vector<8x32xf32>
    %26 = vector.extract_strided_slice %22 {offsets = [0, 0], sizes = [8, 32], strides = [1, 1]} : vector<8x64xf32> to vector<8x32xf32>
    %27 = arith.addf %26, %25 : vector<8x32xf32>
    %28 = vector.extract_strided_slice %22 {offsets = [0, 32], sizes = [8, 32], strides = [1, 1]} : vector<8x64xf32> to vector<8x32xf32>
    %29 = arith.addf %28, %25 : vector<8x32xf32>
    %30 = arith.mulf %3, %27 : vector<8x32xf32>
    %cst_17 = arith.constant dense<0.000000e+00> : vector<8xf32>
    %31 = vector.multi_reduction <add>, %30, %cst_17 [1] : vector<8x32xf32> to vector<8xf32>
    %32 = vector.shape_cast %31 : vector<8xf32> to vector<8x1xf32>
    %cst_18 = arith.constant 0.176776692 : f32
    %33 = vector.broadcast %cst_18 : f32 to vector<8x1xf32>
    %34 = arith.mulf %32, %33 : vector<8x1xf32>
    %35 = arith.maximumf %20, %34 : vector<8x1xf32>
    %36 = arith.subf %20, %35 : vector<8x1xf32>
    %37 = math.exp %36 : vector<8x1xf32>
    %38 = arith.subf %34, %35 : vector<8x1xf32>
    %39 = math.exp %38 : vector<8x1xf32>
    %40 = arith.mulf %21, %37 : vector<8x1xf32>
    %41 = arith.addf %40, %39 : vector<8x1xf32>
    %42 = vector.broadcast %37 : vector<8x1xf32> to vector<8x32xf32>
    %43 = arith.mulf %15, %42 : vector<8x32xf32>
    %44 = vector.broadcast %39 : vector<8x1xf32> to vector<8x32xf32>
    %45 = arith.mulf %44, %29 : vector<8x32xf32>
    %46 = arith.addf %43, %45 : vector<8x32xf32>
    %47 = vector.extract_strided_slice %7 {offsets = [16, 0], sizes = [8, 64], strides = [1, 1]} : vector<32x64xf32> to vector<8x64xf32>
    %c2 = arith.constant 2 : index
    %c0_19 = arith.constant 0 : index
    %c0_20 = arith.constant 0 : index
    %48 = vector.load %arg3[%c2, %c0_19, %c0_20] : memref<4x8x32xbf16, #tpu.memory_space<vmem>>, vector<1x8x32xbf16>
    %49 = vector.shape_cast %48 : vector<1x8x32xbf16> to vector<8x32xbf16>
    %50 = arith.extf %49 : vector<8x32xbf16> to vector<8x32xf32>
    %51 = vector.extract_strided_slice %47 {offsets = [0, 0], sizes = [8, 32], strides = [1, 1]} : vector<8x64xf32> to vector<8x32xf32>
    %52 = arith.addf %51, %50 : vector<8x32xf32>
    %53 = vector.extract_strided_slice %47 {offsets = [0, 32], sizes = [8, 32], strides = [1, 1]} : vector<8x64xf32> to vector<8x32xf32>
    %54 = arith.addf %53, %50 : vector<8x32xf32>
    %55 = arith.mulf %3, %52 : vector<8x32xf32>
    %cst_21 = arith.constant dense<0.000000e+00> : vector<8xf32>
    %56 = vector.multi_reduction <add>, %55, %cst_21 [1] : vector<8x32xf32> to vector<8xf32>
    %57 = vector.shape_cast %56 : vector<8xf32> to vector<8x1xf32>
    %cst_22 = arith.constant 0.176776692 : f32
    %58 = vector.broadcast %cst_22 : f32 to vector<8x1xf32>
    %59 = arith.mulf %57, %58 : vector<8x1xf32>
    %60 = arith.maximumf %35, %59 : vector<8x1xf32>
    %61 = arith.subf %35, %60 : vector<8x1xf32>
    %62 = math.exp %61 : vector<8x1xf32>
    %63 = arith.subf %59, %60 : vector<8x1xf32>
    %64 = math.exp %63 : vector<8x1xf32>
    %65 = arith.mulf %41, %62 : vector<8x1xf32>
    %66 = arith.addf %65, %64 : vector<8x1xf32>
    %67 = vector.broadcast %62 : vector<8x1xf32> to vector<8x32xf32>
    %68 = arith.mulf %46, %67 : vector<8x32xf32>
    %69 = vector.broadcast %64 : vector<8x1xf32> to vector<8x32xf32>
    %70 = arith.mulf %69, %54 : vector<8x32xf32>
    %71 = arith.addf %68, %70 : vector<8x32xf32>
    %72 = vector.extract_strided_slice %7 {offsets = [24, 0], sizes = [8, 64], strides = [1, 1]} : vector<32x64xf32> to vector<8x64xf32>
    %c3 = arith.constant 3 : index
    %c0_23 = arith.constant 0 : index
    %c0_24 = arith.constant 0 : index
    %73 = vector.load %arg3[%c3, %c0_23, %c0_24] : memref<4x8x32xbf16, #tpu.memory_space<vmem>>, vector<1x8x32xbf16>
    %74 = vector.shape_cast %73 : vector<1x8x32xbf16> to vector<8x32xbf16>
    %75 = arith.extf %74 : vector<8x32xbf16> to vector<8x32xf32>
    %76 = vector.extract_strided_slice %72 {offsets = [0, 0], sizes = [8, 32], strides = [1, 1]} : vector<8x64xf32> to vector<8x32xf32>
    %77 = arith.addf %76, %75 : vector<8x32xf32>
    %78 = vector.extract_strided_slice %72 {offsets = [0, 32], sizes = [8, 32], strides = [1, 1]} : vector<8x64xf32> to vector<8x32xf32>
    %79 = arith.addf %78, %75 : vector<8x32xf32>
    %80 = arith.mulf %3, %77 : vector<8x32xf32>
    %cst_25 = arith.constant dense<0.000000e+00> : vector<8xf32>
    %81 = vector.multi_reduction <add>, %80, %cst_25 [1] : vector<8x32xf32> to vector<8xf32>
    %82 = vector.shape_cast %81 : vector<8xf32> to vector<8x1xf32>
    %cst_26 = arith.constant 0.176776692 : f32
    %83 = vector.broadcast %cst_26 : f32 to vector<8x1xf32>
    %84 = arith.mulf %82, %83 : vector<8x1xf32>
    %85 = arith.maximumf %60, %84 : vector<8x1xf32>
    %86 = arith.subf %60, %85 : vector<8x1xf32>
    %87 = math.exp %86 : vector<8x1xf32>
    %88 = arith.subf %84, %85 : vector<8x1xf32>
    %89 = math.exp %88 : vector<8x1xf32>
    %90 = arith.mulf %66, %87 : vector<8x1xf32>
    %91 = arith.addf %90, %89 : vector<8x1xf32>
    %92 = vector.broadcast %87 : vector<8x1xf32> to vector<8x32xf32>
    %93 = arith.mulf %71, %92 : vector<8x32xf32>
    %94 = vector.broadcast %89 : vector<8x1xf32> to vector<8x32xf32>
    %95 = arith.mulf %94, %79 : vector<8x32xf32>
    %96 = arith.addf %93, %95 : vector<8x32xf32>
    %97 = tpu.reciprocal %91 {approx = true} : vector<8x1xf32> -> vector<8x1xf32>
    %98 = vector.broadcast %97 : vector<8x1xf32> to vector<8x32xf32>
    %99 = arith.mulf %96, %98 : vector<8x32xf32>
    %100 = arith.truncf %99 : vector<8x32xf32> to vector<8x32xbf16>
    %c0_27 = arith.constant 0 : index
    %c0_28 = arith.constant 0 : index
    %101 = vector.load %arg6[%c0_27, %c0_28] : memref<32x32xbf16, #tpu.memory_space<vmem>>, vector<32x32xbf16>
    %cst_29 = arith.constant dense<0.000000e+00> : vector<8x32xf32>
    %102 = tpu.matmul %100, %101, %cst_29 {dimension_numbers = #tpu.dot_dimension_numbers<[1], [0], [0], [1], [0, 0, 1, 1], [], []>} : vector<8x32xbf16>, vector<32x32xbf16>, vector<8x32xf32> -> vector<8x32xf32>
    %103 = arith.addf %0, %102 : vector<8x32xf32>
    %cst_30 = arith.constant dense<0.000000e+00> : vector<8xf32>
    %104 = vector.multi_reduction <add>, %103, %cst_30 [1] : vector<8x32xf32> to vector<8xf32>
    %105 = vector.shape_cast %104 : vector<8xf32> to vector<8x1xf32>
    %106 = arith.mulf %103, %103 : vector<8x32xf32>
    %cst_31 = arith.constant dense<0.000000e+00> : vector<8xf32>
    %107 = vector.multi_reduction <add>, %106, %cst_31 [1] : vector<8x32xf32> to vector<8xf32>
    %108 = vector.shape_cast %107 : vector<8xf32> to vector<8x1xf32>
    %cst_32 = arith.constant 3.125000e-02 : f32
    %109 = vector.broadcast %cst_32 : f32 to vector<8x1xf32>
    %110 = arith.mulf %105, %109 : vector<8x1xf32>
    %cst_33 = arith.constant 3.125000e-02 : f32
    %111 = vector.broadcast %cst_33 : f32 to vector<8x1xf32>
    %112 = arith.mulf %108, %111 : vector<8x1xf32>
    %113 = arith.mulf %110, %110 : vector<8x1xf32>
    %114 = arith.subf %112, %113 : vector<8x1xf32>
    %115 = vector.broadcast %110 : vector<8x1xf32> to vector<8x32xf32>
    %116 = arith.subf %103, %115 : vector<8x32xf32>
    %cst_34 = arith.constant 9.99999974E-6 : f32
    %117 = vector.broadcast %cst_34 : f32 to vector<8x1xf32>
    %118 = arith.addf %114, %117 : vector<8x1xf32>
    %119 = math.rsqrt %118 : vector<8x1xf32>
    %120 = vector.broadcast %119 : vector<8x1xf32> to vector<8x32xf32>
    %121 = arith.mulf %116, %120 : vector<8x32xf32>
    %c0_35 = arith.constant 0 : index
    %c0_36 = arith.constant 0 : index
    %122 = vector.load %arg7[%c0_35, %c0_36] : memref<1x32xf32, #tpu.memory_space<vmem>>, vector<1x32xf32>
    %123 = vector.broadcast %122 : vector<1x32xf32> to vector<8x32xf32>
    %124 = arith.mulf %121, %123 : vector<8x32xf32>
    %c0_37 = arith.constant 0 : index
    %c0_38 = arith.constant 0 : index
    %125 = vector.load %arg8[%c0_37, %c0_38] : memref<1x32xf32, #tpu.memory_space<vmem>>, vector<1x32xf32>
    %126 = vector.broadcast %125 : vector<1x32xf32> to vector<8x32xf32>
    %127 = arith.addf %124, %126 : vector<8x32xf32>
    %c0_39 = arith.constant 0 : index
    %c0_40 = arith.constant 0 : index
    %128 = vector.load %arg9[%c0_39, %c0_40] : memref<8x32xf32, #tpu.memory_space<vmem>>, vector<8x32xf32>
    tpu.vector_store %arg9[%c0_39, %c0_40], %127 {strides = array<i32>} : memref<8x32xf32, #tpu.memory_space<vmem>>, vector<8x32xf32>,
    return
  }
  func.func @transform_0(%arg0: i32) -> (i32, i32) {
    %c0_i32 = arith.constant 0 : i32
    %c0_i32_0 = arith.constant 0 : i32
    return %arg0, %c0_i32 : i32, i32
  }
  func.func @transform_1(%arg0: i32) -> (i32, i32, i32) {
    %c0_i32 = arith.constant 0 : i32
    %c0_i32_0 = arith.constant 0 : i32
    %c0_i32_1 = arith.constant 0 : i32
    return %c0_i32, %arg0, %c0_i32_0 : i32, i32, i32
  }
  func.func @transform_2(%arg0: i32) -> (i32, i32, i32) {
    %c0_i32 = arith.constant 0 : i32
    %c0_i32_0 = arith.constant 0 : i32
    %c0_i32_1 = arith.constant 0 : i32
    return %c0_i32, %arg0, %c0_i32_0 : i32, i32, i32
  }
  func.func @transform_3(%arg0: i32) -> (i32, i32) {
    %c0_i32 = arith.constant 0 : i32
    %c0_i32_0 = arith.constant 0 : i32
    %c0_i32_1 = arith.constant 0 : i32
    return %c0_i32, %c0_i32_0 : i32, i32
  }
  func.func @transform_4(%arg0: i32) -> (i32, i32) {
    %c0_i32 = arith.constant 0 : i32
    %c0_i32_0 = arith.constant 0 : i32
    %c0_i32_1 = arith.constant 0 : i32
    return %c0_i32, %c0_i32_0 : i32, i32
  }
  func.func @transform_5(%arg0: i32) -> (i32, i32) {
    %c0_i32 = arith.constant 0 : i32
    %c0_i32_0 = arith.constant 0 : i32
    %c0_i32_1 = arith.constant 0 : i32
    return %c0_i32, %c0_i32_0 : i32, i32
  }
  func.func @transform_6(%arg0: i32) -> (i32, i32) {
    %c0_i32 = arith.constant 0 : i32
    %c0_i32_0 = arith.constant 0 : i32
    %c0_i32_1 = arith.constant 0 : i32
    return %c0_i32, %c0_i32_0 : i32, i32
  }
  func.func @transform_7(%arg0: i32) -> (i32, i32) {
    %c0_i32 = arith.constant 0 : i32
    %c0_i32_0 = arith.constant 0 : i32
    %c0_i32_1 = arith.constant 0 : i32
    return %c0_i32, %c0_i32_0 : i32, i32
  }
  func.func @transform_8(%arg0: i32) -> (i32, i32) {
    %c0_i32 = arith.constant 0 : i32
    %c0_i32_0 = arith.constant 0 : i32
    return %arg0, %c0_i32 : i32, i32
  }
}

</mosaic_0001>

<bundles_post_ra>
// kernel: kg_adapter_forward.2
= control target key start
LH: loop header
LB: loop body
LE: loop exit
PB: predicated region body
PF: predicated region fallthrough
CT: control target
= control target key end

     0   :  { %s519_s0 = inlined_call_operand.vmem [shape: f32[8,32], index: 0, kind: input, shape index: {}]   ;;  %s520_s1 = inlined_call_operand.vmem [shape: bf16[4,8,32], index: 1, kind: input, shape index: {}]   ;;  %s521_s2 = inlined_call_operand.vmem [shape: bf16[4,8,32], index: 2, kind: input, shape index: {}]   ;;  %s522_s3 = inlined_call_operand.vmem [shape: bf16[32,32], index: 3, kind: input, shape index: {}]   ;;  %s523_s4 = inlined_call_operand.vmem [shape: bf16[32,64], index: 4, kind: input, shape index: {}]   ;;  %s524_s5 = inlined_call_operand.vmem [shape: bf16[32,32], index: 5, kind: input, shape index: {}]   ;;  %s525_s6 = inlined_call_operand.vmem [shape: f32[1,32], index: 6, kind: input, shape index: {}]   ;;  %s526_s7 = inlined_call_operand.vmem [shape: f32[1,32], index: 7, kind: input, shape index: {}]   ;;  %s527_s8 = inlined_call_operand.hbm [shape: f32[8,32], index: 8, kind: output, shape index: {}]  }
   0x1   :  { %v341_v0 = vld [vmem:[%s522_s3 + $0x8] sm:$0xff]  ;;  %v340_v2 = vld [vmem:[%s522_s3] sm:$0xff] }
   0x2   :  { %v345_v1 = vld [vmem:[%s523_s4 + $0x8] sm:$0xff]  ;;  %59 = vmatpush.bf16.msra.mxu0 %v341_v0  ;;  %v344_v3 = vld [vmem:[%s523_s4] sm:$0xff] }
   0x3   :  { %108 = vmatpush.bf16.msra.mxu1 %v345_v1  ;;  %v465_v4 = vld [vmem:[%s519_s0] sm:$0xff]  ;;  %348 = vmatpush.bf16.msra.mxu3 %v345_v1 }
   0x4   :  { %v121_v5 = vld [vmem:[%s521_s2] sm:$0xff]  }
   0x5   :  { %v122_v6 = vunpack.c.l.bf16 %v121_v5  ;;  %v136_v7 = vunpack.c.h.bf16 %v121_v5 }
   0x6   :  { %13 = vsyncpa [#allocation3], 0  ;;  %v32_v8 = vpack.c.bf16 %v465_v4, %v465_v4  ;;  %v342_v9 = vld [vmem:[%s520_s1] sm:$0xff]  ;;  %60 = vmatpush.bf16.msra.mxu0 %v340_v2  ;;  %vm49_vm0 = vcmask 261120   ;;  %v343_v11 = vld [vmem:[%s520_s1 + $0x8] sm:$0xff]  ;;  %s402_s18 = smov 32  }
   0x7   :  { %v353_v10 = vpack.i.bf16 %v136_v7, %v122_v6  ;;  %109 = vmatpush.bf16.msra.mxu1 %v344_v3  ;;  %349 = vmatpush.bf16.msra.mxu3 %v344_v3  ;;  %v329_v12 = vld [vmem:[%s521_s2 + $0x8] sm:$0xff]   ;;  %v346_v51 = vld [vmem:[%s524_s5] sm:$0xff]  ;;  %s404_s27 = smov [#allocation2]   ;;  %s292_s9 = sshll.u32 %s527_s8, 4  ;;  %s293_s9 = int_to_ptr.hbm [resolvable:$true] %s292_s9 }
   0x8   :  { %v161_v13 = vunpack.c.l.bf16 %v329_v12  ;;  %v187_v27 = vunpack.c.h.bf16 %v329_v12  ;;  %v347_v44 = vld [vmem:[%s524_s5 + $0x8] sm:$0xff]  ;;  %s403_s5 = smov 96   ;;  %s290_s28 = sshll.u32 %s404_s27, 4  ;;  %s291_s28 = int_to_ptr.vmem [resolvable:$true] %s290_s28 }
   0x9   :  { %354 = vrot.lane.b32.xlu2 %v353_v10, %s402_s18  ;;  %309 = vmatmul.msk.bf16.vlgmr.msra.gmra.mxu0 %vm49_vm0, %v32_v8 }
   0xa   :  { %326 = vmatmul.msk.bf16.vlgmr.msra.gmra.mxu1 %vm49_vm0, %v342_v9  ;;  %327 = vmatmul.msk.bf16.vlgmr.msra.gmra.mxu3 %vm49_vm0, %v343_v11 }
   0xb   :  { %242 = vmatpush.bf16.msra.mxu2 %v347_v44 }
   0xf   :  { %243 = vmatpush.bf16.msra.mxu2 %v346_v51 }
  0x11   :  { %164 = vrot.lane.b32.xlu2 %v161_v13, %s402_s18 }
  0x63   :  { %v355_v43 = vpop.permute.xlu2 %354 }
  0x64   :  { %v356_v54 = vunpack.i.l.bf16 %v355_v43  ;;  %v357_v56 = vunpack.i.h.bf16 %v355_v43 }
  0x6b   :  { %v165_v1 = vpop.permute.xlu2 %164 }
  0x86   :  { %v62_v14 = vpop.f32.mrf.mxu0 }
  0x87   :  { %v111_v15 = vpop.f32.mrf.mxu1 }
  0x88   :  { %v123_v16 = vadd.f32 %v122_v6, %v111_v15  ;;  %v128_v59 = vadd.f32 %v356_v54, %v111_v15 }
  0x8a   :  { %v129_v17 = vmul.f32 %v123_v16, %v62_v14 }
  0x8c   :  { %v130_v18 = vsel %vm49_vm0, %v129_v17, 0.0 }
  0x8d   :  { %131 = vadd.xlane.f32.xlu0 %v130_v18  ;;  %v487_v19 = vpop.f32.mrf.mxu3 }
  0x8e   :  { %v162_v20 = vadd.f32 %v161_v13, %v487_v19  ;;  %v64_v21 = vpop.f32.mrf.mxu0  ;;  %v167_v8 = vadd.f32 %v165_v1, %v487_v19 }
  0x8f   :  { %v113_v22 = vpop.f32.mrf.mxu1 }
  0x90   :  { %v137_v23 = vadd.f32 %v136_v7, %v113_v22  ;;  %v168_v24 = vmul.f32 %v162_v20, %v62_v14  ;;  %v142_v63 = vadd.f32 %v357_v56, %v113_v22 }
  0x92   :  { %v143_v25 = vmul.f32 %v137_v23, %v62_v14  ;;  %v169_v26 = vsel %vm49_vm0, %v168_v24, 0.0 }
  0x93   :  { %170 = vadd.xlane.f32.xlu1 %v169_v26 }
  0x94   :  { %v144_v28 = vsel %vm49_vm0, %v143_v25, 0.0 }
  0x95   :  { %145 = vadd.xlane.f32.xlu0 %v144_v28  ;;  %v492_v29 = vpop.f32.mrf.mxu3 }
  0x96   :  { %v188_v30 = vadd.f32 %v187_v27, %v492_v29 }
  0x98   :  { %v194_v31 = vmul.f32 %v188_v30, %v62_v14 }
  0x9a   :  { %v195_v32 = vsel %vm49_vm0, %v194_v31, 0.0 }
  0x9b   :  { %196 = vadd.xlane.f32.xlu1 %v195_v32 }
  0xa9   :  { %190 = vrot.lane.b32.xlu0 %v187_v27, %s402_s18 }
 0x100   :  { %v132_v33 = vpop.xlane.xlu0 %131 }
 0x101   :  { %v133_v36 = vmul.f32 0.17677669, %v132_v33 }
 0x106   :  { %v171_v34 = vpop.xlane.xlu1 %170 }
 0x107   :  { %v172_v38 = vmul.f32 0.17677669, %v171_v34 }
 0x108   :  { %v146_v35 = vpop.xlane.xlu0 %145 }
 0x109   :  { %v147_v37 = vmul.f32 0.17677669, %v146_v35 }
 0x10b   :  { %v148_v39 = vmax.f32 %v133_v36, %v147_v37 }
 0x10d   :  { %v149_v40 = vsub.f32 %v133_v36, %v148_v39  ;;  %v152_v41 = vsub.f32 %v147_v37, %v148_v39  ;;  %v173_v42 = vmax.f32 %v148_v39, %v172_v38 }
 0x10e   :  { %v197_v49 = vpop.xlane.xlu1 %196 }
 0x10f   :  { %v150_v45 = vmul.f32 1.442695, %v149_v40  ;;  %v153_v46 = vmul.f32 1.442695, %v152_v41  ;;  %v174_v47 = vsub.f32 %v148_v39, %v173_v42  ;;  %v177_v48 = vsub.f32 %v172_v38, %v173_v42 }
 0x110   :  { %v198_v50 = vmul.f32 0.17677669, %v197_v49 }
 0x111   :  { %360 = vpow2.f32 %v150_v45  ;;  %v175_v52 = vmul.f32 1.442695, %v174_v47  ;;  %v178_v53 = vmul.f32 1.442695, %v177_v48  ;;  %v358_v47 = vld [vmem:[%s525_s6] ss:$0 sm:$0xff] }
 0x112   :  { %362 = vpow2.f32 %v153_v46  ;;  %v199_v55 = vmax.f32 %v173_v42, %v198_v50 }
 0x113   :  { %364 = vpow2.f32 %v175_v52 }
 0x114   :  { %366 = vpow2.f32 %v178_v53  ;;  %v200_v57 = vsub.f32 %v173_v42, %v199_v55  ;;  %v203_v58 = vsub.f32 %v198_v50, %v199_v55  ;;  %v359_v50 = vld [vmem:[%s526_s7] ss:$0 sm:$0xff] }
 0x116   :  { %v201_v60 = vmul.f32 1.442695, %v200_v57  ;;  %v204_v61 = vmul.f32 1.442695, %v203_v58 }
 0x117   :  { %v361_v62 = vpop.eup %360 }
 0x118   :  { %v363_v0 = vpop.eup %362  ;;  %368 = vpow2.f32 %v201_v60  ;;  %v156_v2 = vmul.f32 %v361_v62, %v128_v59 }
 0x119   :  { %v365_v3 = vpop.eup %364  ;;  %v155_v5 = vadd.f32 %v363_v0, %v361_v62  ;;  %v157_v6 = vmul.f32 %v363_v0, %v142_v63  ;;  %370 = vpow2.f32 %v204_v61 }
 0x11a   :  { %v367_v7 = vpop.eup %366 }
 0x11b   :  { %v180_v9 = vmul.f32 %v365_v3, %v155_v5  ;;  %v158_v10 = vadd.f32 %v157_v6, %v156_v2  ;;  %v183_v13 = vmul.f32 %v367_v7, %v167_v8  ;;  %v191_v17 = vpop.permute.xlu0 %190 }
 0x11c   :  { %v193_v21 = vadd.f32 %v191_v17, %v492_v29 }
 0x11d   :  { %v181_v11 = vadd.f32 %v367_v7, %v180_v9  ;;  %v182_v12 = vmul.f32 %v365_v3, %v158_v10 }
 0x11e   :  { %v369_v14 = vpop.eup %368 }
 0x11f   :  { %v206_v15 = vmul.f32 %v369_v14, %v181_v11  ;;  %v184_v16 = vadd.f32 %v183_v13, %v182_v12  ;;  %v371_v18 = vpop.eup %370 }
 0x120   :  { %v209_v23 = vmul.f32 %v371_v18, %v193_v21 }
 0x121   :  { %v207_v20 = vadd.f32 %v371_v18, %v206_v15  ;;  %v208_v22 = vmul.f32 %v369_v14, %v184_v16 }
 0x123   :  { %372 = vrcp.f32 %v207_v20  ;;  %v210_v24 = vadd.f32 %v209_v23, %v208_v22 }
 0x129   :  { %v373_v25 = vpop.eup %372 }
 0x12a   :  { %v212_v26 = vmul.f32 %v373_v25, %v210_v24 }
 0x12c   :  { %v213_v19 = vpack.c.bf16 %v212_v26, %v212_v26 }
 0x12e   :  { %219 = vrot.lane.b32.xlu1 %v213_v19, %s403_s5 }
 0x1a0   :  { %v220_v27 = vpop.permute.xlu1 %219 }
 0x1a1   :  { %339 = vmatmul.msk.bf16.vlgmr.msra.gmra.mxu2 %vm49_vm0, %v220_v27 }
 0x224   :  { %v245_v28 = vpop.f32.mrf.mxu2 }
 0x225   :  { %v249_v30 = vadd.f32 %v245_v28, %v465_v4 }
 0x227   :  { %v250_v31 = vsel %vm49_vm0, %v249_v30, 0.0  ;;  %v253_v32 = vmul.f32 %v249_v30, %v249_v30 }
 0x228   :  { %251 = vadd.xlane.f32.xlu2 %v250_v31 }
 0x229   :  { %v254_v29 = vsel %vm49_vm0, %v253_v32, 0.0 }
 0x22a   :  { %255 = vadd.xlane.f32.xlu0 %v254_v29 }
 0x22c   :  { %v247_v33 = vpop.f32.mrf.mxu2 }
 0x29b   :  { %v252_v34 = vpop.xlane.xlu2 %251 }
 0x29c   :  { %v257_v35 = vmul.f32 0.03125, %v252_v34 }
 0x29d   :  { %v256_v36 = vpop.xlane.xlu0 %255 }
 0x29e   :  { %v259_v37 = vmul.f32 %v257_v35, %v257_v35  ;;  %v258_v38 = vmul.f32 0.03125, %v256_v36  ;;  %v261_v46 = vsub.f32 %v249_v30, %v257_v35 }
 0x2a0   :  { %v260_v39 = vsub.f32 %v258_v38, %v259_v37 }
 0x2a2   :  { %v262_v40 = vadd.f32 1e-05, %v260_v39 }
 0x2a4   :  { %374 = vrsqrt.f32 %v262_v40  ;;  %vm269_vm2 = vweird.f32 %v262_v40 }
 0x2aa   :  { %v375_v41 = vpop.eup %374 }
 0x2ab   :  { %v264_v42 = vmul.f32 %v375_v41, %v262_v40  ;;  %vm270_vm1 = vweird.f32 %v375_v41 }
 0x2ac   :  { %vm271_vm3 = vmor %vm269_vm2, %vm270_vm1 }
 0x2ad   :  { %v265_v43 = vmul.f32 %v375_v41, %v264_v42 }
 0x2af   :  { %v266_v4 = vmul.f32 0.5, %v265_v43 }
 0x2b1   :  { %v267_v44 = vsub.f32 1.5, %v266_v4 }
 0x2b3   :  { %v268_v45 = vmul.f32 %v375_v41, %v267_v44 }
 0x2b5   :  { %v272_v48 = vsel %vm271_vm3, %v375_v41, %v268_v45 }
 0x2b6   :  { %v273_v49 = vmul.f32 %v272_v48, %v261_v46 }
 0x2b8   :  { %v278_v51 = vmul.f32 %v358_v47, %v273_v49 }
 0x2ba   :  { %v283_v52 = vadd.f32 %v359_v50, %v278_v51 }
 0x2bc   :  { %284 = vst.msk [vmem:[#allocation2] sm:$0xff] %vm49_vm0, %v283_v52 }
 0x2bd   :  { %295 = dma.vmem_to_hbm [thread:$0]  %s291_s28, 128, %s293_s9, [#allocation3]  }
 0x2be   :  { %400 = dma.done.wait [#allocation3], 128  }
 0x2bf   :  { %401 = vsyncadd [#allocation3], 4294967168 }
 0x2c0   :  { %300 = vsyncpa [#allocation3], 1 }

// kernel: kg_adapter_forward.3
= control target key start
LH: loop header
LB: loop body
LE: loop exit
PB: predicated region body
PF: predicated region fallthrough
CT: control target
= control target key end

     0   :  { %s286_s0 = inlined_call_operand.vmem [shape: bf16[8,96], index: 0, kind: input, shape index: {}]   ;;  %s287_s1 = inlined_call_operand.vmem [shape: bf16[96,32], index: 1, kind: input, shape index: {}]   ;;  %s288_s2 = inlined_call_operand.vmem [shape: f32[1,32], index: 2, kind: input, shape index: {}]   ;;  %s289_s3 = inlined_call_operand.vmem [shape: bf16[32,32], index: 3, kind: input, shape index: {}]   ;;  %s290_s4 = inlined_call_operand.vmem [shape: f32[1,32], index: 4, kind: input, shape index: {}]   ;;  %s291_s5 = inlined_call_operand.hbm [shape: f32[8,32], index: 5, kind: output, shape index: {}]  }
   0x1   :  { %v187_v0 = vld [vmem:[%s287_s1 + $0x28] sm:$0xff]  ;;  %v186_v1 = vld [vmem:[%s287_s1 + $0x20] sm:$0xff] }
   0x2   :  { %81 = vmatpush.bf16.msra.mxu0 %v187_v0 }
   0x3   :  { %10 = vsyncpa [#allocation3], 0  ;;  %v185_v2 = vld [vmem:[%s287_s1 + $0x18] sm:$0xff]  ;;  %v184_v3 = vld [vmem:[%s287_s1 + $0x10] sm:$0xff]  ;;  %vm75_vm0 = vcmask 785408   ;;  %vm114_vm1 = vcmask 261120  }
   0x4   :  { %v183_v4 = vld [vmem:[%s287_s1 + $0x8] sm:$0xff]  ;;  %v182_v5 = vld [vmem:[%s287_s1] sm:$0xff]  ;;  %s219_s13 = smov [#allocation2]   ;;  %s139_s16 = sshll.u32 %s291_s5, 4  ;;  %s140_s16 = int_to_ptr.hbm [resolvable:$true] %s139_s16 }
   0x5   :  { %v22_v6 = vld [vmem:[%s286_s0] sm:$0xf]  ;;  %v189_v7 = vld [vmem:[%s289_s3 + $0x8] sm:$0xff]  ;;  %s137_s14 = sshll.u32 %s219_s13, 4  ;;  %s138_s14 = int_to_ptr.vmem [resolvable:$true] %s137_s14 }
   0x6   :  { %82 = vmatpush.bf16.msra.mxu0 %v186_v1  ;;  %124 = vmatpush.bf16.msra.mxu1 %v189_v7  ;;  %v188_v8 = vld [vmem:[%s289_s3] sm:$0xff] }
   0x7   :  { %v191_v9 = vld [vmem:[%s288_s2] ss:$0 sm:$0xff] }
   0x8   :  { %v192_v15 = vld [vmem:[%s290_s4] ss:$0 sm:$0xff] }
   0xa   :  { %83 = vmatpush.bf16.msra.mxu0 %v185_v2  ;;  %125 = vmatpush.bf16.msra.mxu1 %v188_v8 }
   0xe   :  { %84 = vmatpush.bf16.msra.mxu0 %v184_v3 }
  0x12   :  { %85 = vmatpush.bf16.msra.mxu0 %v183_v4 }
  0x16   :  { %86 = vmatpush.bf16.msra.mxu0 %v182_v5 }
  0x19   :  { %172 = vmatmul.msk.bf16.vlgmr.msra.gmra.mxu0 %vm75_vm0, %v22_v6 }
  0x96   :  { %v88_v10 = vpop.f32.mrf.mxu0 }
  0x97   :  { %v89_v11 = vadd.f32 %v191_v9, %v88_v10 }
  0x99   :  { %v92_v12 = vmax.f32 %v89_v11, 0.0 }
  0x9b   :  { %v93_v13 = vpack.c.bf16 %v92_v12, %v92_v12 }
  0x9d   :  { %181 = vmatmul.msk.bf16.vlgmr.msra.gmra.mxu1 %vm114_vm1, %v93_v13 }
  0x9e   :  { %v90_v14 = vpop.f32.mrf.mxu0 }
 0x11a   :  { %v127_v16 = vpop.f32.mrf.mxu1 }
 0x11b   :  { %v128_v17 = vadd.f32 %v192_v15, %v127_v16 }
 0x11d   :  { %131 = vst.msk [vmem:[#allocation2] sm:$0xff] %vm114_vm1, %v128_v17 }
 0x11e   :  { %142 = dma.vmem_to_hbm [thread:$0]  %s138_s14, 128, %s140_s16, [#allocation3]  }
 0x122   :  { %v129_v18 = vpop.f32.mrf.mxu1 }
 0x123   :  { %217 = dma.done.wait [#allocation3], 128  }
 0x124   :  { %218 = vsyncadd [#allocation3], 4294967168 }
 0x125   :  { %147 = vsyncpa [#allocation3], 1 }

</bundles_post_ra>
